<compile_context>
chip_gen: v7x
topology: tpu7x:2x2x1
jax: 0.10.0
libtpu: 0.0.40
codegen_flags: <defaults>
</compile_context>

<pallas_src>
import functools

import jax
import jax.numpy as jnp
from jax.experimental import pallas as pl
from jax.experimental.pallas import tpu as pltpu


def _se_kernel(x_ref, w1_ref, w2_ref, o_ref, *, inv_hw):
    # x_ref / o_ref: [Bt, C, HW_pad]   w1_ref: [C, Cm_pad]   w2_ref: [Cm_pad, C]
    x = x_ref[...]

    # Squeeze: global average pool over the spatial (lane-dense) axis.
    # f32 accumulation without materializing an f32 copy of the big tensor.
    pooled = jnp.sum(x, axis=-1, dtype=jnp.float32) * inv_hw            # [Bt, C]

    # Excitation: Linear -> ReLU -> Linear -> Sigmoid (gate path in f32, MXU).
    h = jnp.dot(pooled, w1_ref[...], preferred_element_type=jnp.float32)
    h = jnp.maximum(h, 0.0)
    g = jnp.dot(h, w2_ref[...], preferred_element_type=jnp.float32)     # [Bt, C]
    g = jax.nn.sigmoid(g)                                               # EUP

    # Scale: broadcast the channel gate over the spatial axis, in input dtype.
    o_ref[...] = x * g.astype(o_ref.dtype)[:, :, None]


def se_layer(x, w1, w2):
    """x: [B, C, H, W] (NCHW). w1: [C, C_mid], w2: [C_mid, C] (nn.Linear,
    bias=False, weights stored as [in, out]). Returns [B, C, H, W]."""
    B, C, H, W = x.shape
    HW = H * W
    Cin, Cmid = w1.shape
    assert Cin == C and w2.shape == (Cmid, C)

    # --- layout plumbing (wrapper-side) -------------------------------------
    # Lane-dense spatial axis: pad HW up to a multiple of 128 (unmasked stores).
    HW_pad = ((HW + 127) // 128) * 128
    x_flat = x.reshape(B, C, HW)
    if HW_pad != HW:
        x_flat = jnp.pad(x_flat, ((0, 0), (0, 0), (0, HW_pad - HW)))

    # Pad the SE bottleneck to 128 lanes (zero padding is numerically exact).
    Cm_pad = ((Cmid + 127) // 128) * 128
    if Cm_pad != Cmid:
        w1 = jnp.pad(w1, ((0, 0), (0, Cm_pad - Cmid)))
        w2 = jnp.pad(w2, ((0, Cm_pad - Cmid), (0, 0)))

    # --- batch tiling --------------------------------------------------------
    # Largest batch tile that (a) divides B, (b) keeps the block under ~8 MiB
    # (double-buffered in+out + weights stays inside scoped VMEM everywhere),
    # and (c) leaves >= 2 grid steps when possible so v7x can shard them
    # across its two TensorCores.
    budget_bytes = 8 * 1024 * 1024
    per_batch_bytes = C * HW_pad * x.dtype.itemsize
    bt = 1
    for cand in range(B, 0, -1):
        if B % cand != 0:
            continue
        if cand * per_batch_bytes > budget_bytes:
            continue
        if (B // cand) < min(2, B):
            continue
        bt = cand
        break

    block_bytes = bt * per_batch_bytes
    weight_bytes = (C * Cm_pad + Cm_pad * C) * w1.dtype.itemsize
    # Scoped-VMEM budget: double-buffered in + out blocks, weights, slack.
    # Cap at 60 MiB so it also fits v7x's 64 MiB physical VMEM.
    vmem_limit = int(min(60 * 1024 * 1024,
                         max(32 * 1024 * 1024,
                             4 * block_bytes + weight_bytes + (4 << 20))))

    kernel = functools.partial(_se_kernel, inv_hw=1.0 / HW)
    out = pl.pallas_call(
        kernel,
        out_shape=jax.ShapeDtypeStruct((B, C, HW_pad), x.dtype),
        grid=(B // bt,),
        in_specs=[
            pl.BlockSpec((bt, C, HW_pad), lambda b: (b, 0, 0)),   # x: per-batch tile
            pl.BlockSpec((C, Cm_pad), lambda b: (0, 0)),          # w1: constant, one DMA
            pl.BlockSpec((Cm_pad, C), lambda b: (0, 0)),          # w2: constant, one DMA
        ],
        out_specs=pl.BlockSpec((bt, C, HW_pad), lambda b: (b, 0, 0)),
        compiler_params=pltpu.CompilerParams(
            dimension_semantics=("parallel",),
            vmem_limit_bytes=vmem_limit,
        ),
    )(x_flat, w1, w2)

    if HW_pad != HW:
        out = out[:, :, :HW]
    return out.reshape(B, C, H, W)


if __name__ == "__main__":
    # Small shapes consistent with the module: channel=64, se_ratio=0.75.
    B, C, H, W = 2, 64, 16, 16
    SE_RATIO = 0.75
    C_MID = int(C * SE_RATIO)  # 48

    key = jax.random.PRNGKey(0)
    kx, k1, k2 = jax.random.split(key, 3)

    x = jax.random.normal(kx, (B, C, H, W), dtype=jnp.float32)
    # nn.Linear (bias=False) weights, stored here as [in, out].
    w1 = jax.random.normal(k1, (C, C_MID), dtype=jnp.float32) * 0.05
    w2 = jax.random.normal(k2, (C_MID, C), dtype=jnp.float32) * 0.05

    out = se_layer(x, w1, w2)
    jax.block_until_ready(out)

    # Pure-JAX reference of the same math.
    pooled = jnp.mean(x.reshape(B, C, H * W), axis=-1)
    gate = jax.nn.sigmoid(jnp.maximum(pooled @ w1, 0.0) @ w2)
    ref = x * gate[:, :, None, None]
    assert jnp.allclose(out, ref, atol=1e-5, rtol=1e-5), "mismatch vs reference"

    print("KERNEL_OK")
</pallas_src>

<mosaic_0001>
module attributes {stable_mosaic.version = 11 : i64} {
  func.func @_se_kernel(%arg0: i32, %arg1: memref<1x64x256xf32, #tpu.memory_space<vmem>>, %arg2: memref<64x128xf32, #tpu.memory_space<vmem>>, %arg3: memref<128x64xf32, #tpu.memory_space<vmem>>, %arg4: memref<1x64x256xf32, #tpu.memory_space<vmem>>) attributes {dimension_semantics = [#tpu.dimension_semantics<parallel>], iteration_bounds = array<i64: 2>, scalar_prefetch = 0 : i64, scratch_operands = 0 : i64, tpu.core_type = #tpu.core_type<tc>, window_params = [{transform_indices = @transform_0, window_bounds = array<i64: 1, 64, 256>}, {pipeline_mode = #tpu.pipeline_mode<synchronous>, transform_indices = @transform_1, window_bounds = array<i64: 64, 128>}, {pipeline_mode = #tpu.pipeline_mode<synchronous>, transform_indices = @transform_2, window_bounds = array<i64: 128, 64>}, {transform_indices = @transform_3, window_bounds = array<i64: 1, 64, 256>}]} {
    %c0 = arith.constant 0 : index
    %c0_0 = arith.constant 0 : index
    %c0_1 = arith.constant 0 : index
    %0 = vector.load %arg1[%c0, %c0_0, %c0_1] : memref<1x64x256xf32, #tpu.memory_space<vmem>>, vector<1x64x256xf32>
    %cst = arith.constant dense<0.000000e+00> : vector<1x64xf32>
    %1 = vector.multi_reduction <add>, %0, %cst [2] : vector<1x64x256xf32> to vector<1x64xf32>
    %cst_2 = arith.constant 3.906250e-03 : f32
    %2 = vector.broadcast %cst_2 : f32 to vector<1x64xf32>
    %3 = arith.mulf %1, %2 : vector<1x64xf32>
    %c0_3 = arith.constant 0 : index
    %c0_4 = arith.constant 0 : index
    %4 = vector.load %arg2[%c0_3, %c0_4] : memref<64x128xf32, #tpu.memory_space<vmem>>, vector<64x128xf32>
    %cst_5 = arith.constant dense<0.000000e+00> : vector<1x128xf32>
    %5 = tpu.matmul %3, %4, %cst_5 {dimension_numbers = #tpu.dot_dimension_numbers<[1], [0], [0], [1], [0, 0, 1, 1], [], []>} : vector<1x64xf32>, vector<64x128xf32>, vector<1x128xf32> -> vector<1x128xf32>
    %cst_6 = arith.constant 0.000000e+00 : f32
    %6 = vector.broadcast %cst_6 : f32 to vector<1x128xf32>
    %7 = arith.maximumf %5, %6 : vector<1x128xf32>
    %c0_7 = arith.constant 0 : index
    %c0_8 = arith.constant 0 : index
    %8 = vector.load %arg3[%c0_7, %c0_8] : memref<128x64xf32, #tpu.memory_space<vmem>>, vector<128x64xf32>
    %cst_9 = arith.constant dense<0.000000e+00> : vector<1x64xf32>
    %9 = tpu.matmul %7, %8, %cst_9 {dimension_numbers = #tpu.dot_dimension_numbers<[1], [0], [0], [1], [0, 0, 1, 1], [], []>} : vector<1x128xf32>, vector<128x64xf32>, vector<1x64xf32> -> vector<1x64xf32>
    %10 = arith.negf %9 : vector<1x64xf32>
    %11 = math.exp %10 : vector<1x64xf32>
    %cst_10 = arith.constant 1.000000e+00 : f32
    %12 = vector.broadcast %cst_10 : f32 to vector<1x64xf32>
    %13 = arith.addf %12, %11 : vector<1x64xf32>
    %14 = arith.divf %12, %13 : vector<1x64xf32>
    %15 = vector.shape_cast %14 : vector<1x64xf32> to vector<1x64x1xf32>
    %16 = vector.broadcast %15 : vector<1x64x1xf32> to vector<1x64x256xf32>
    %17 = arith.mulf %0, %16 : vector<1x64x256xf32>
    %c0_11 = arith.constant 0 : index
    %c0_12 = arith.constant 0 : index
    %c0_13 = arith.constant 0 : index
    %18 = vector.load %arg4[%c0_11, %c0_12, %c0_13] : memref<1x64x256xf32, #tpu.memory_space<vmem>>, vector<1x64x256xf32>
    tpu.vector_store %arg4[%c0_11, %c0_12, %c0_13], %17 {strides = array<i32>} : memref<1x64x256xf32, #tpu.memory_space<vmem>>, vector<1x64x256xf32>,
    return
  }
  func.func @transform_0(%arg0: i32) -> (i32, i32, i32) {
    %c0_i32 = arith.constant 0 : i32
    %c0_i32_0 = arith.constant 0 : i32
    %c0_i32_1 = arith.constant 0 : i32
    return %arg0, %c0_i32, %c0_i32_0 : i32, i32, i32
  }
  func.func @transform_1(%arg0: i32) -> (i32, i32) {
    %c0_i32 = arith.constant 0 : i32
    %c0_i32_0 = arith.constant 0 : i32
    %c0_i32_1 = arith.constant 0 : i32
    return %c0_i32, %c0_i32_0 : i32, i32
  }
  func.func @transform_2(%arg0: i32) -> (i32, i32) {
    %c0_i32 = arith.constant 0 : i32
    %c0_i32_0 = arith.constant 0 : i32
    %c0_i32_1 = arith.constant 0 : i32
    return %c0_i32, %c0_i32_0 : i32, i32
  }
  func.func @transform_3(%arg0: i32) -> (i32, i32, i32) {
    %c0_i32 = arith.constant 0 : i32
    %c0_i32_0 = arith.constant 0 : i32
    %c0_i32_1 = arith.constant 0 : i32
    return %arg0, %c0_i32, %c0_i32_0 : i32, i32, i32
  }
}

</mosaic_0001>

<bundles_post_ra>
// kernel: tpu_custom_call.1
= control target key start
LH: loop header
LB: loop body
LE: loop exit
PB: predicated region body
PF: predicated region fallthrough
CT: control target
= control target key end

     0   :  { %8 = vsyncpa [#allocation3], 0  ;;  %s1279_s0 = inlined_call_operand.hbm [shape: f32[2,64,256], index: 0, kind: input, shape index: {}]   ;;  %s1280_s1 = inlined_call_operand.vmem [shape: f32[64,128], index: 1, kind: input, shape index: {}]   ;;  %s1281_s2 = inlined_call_operand.vmem [shape: f32[128,64], index: 2, kind: input, shape index: {}]   ;;  %s1282_s3 = inlined_call_operand.hbm [shape: f32[2,64,256], index: 3, kind: output, shape index: {}]  }
   0x1   :  { %10 = vsyncpa [#allocation3 + $0x1], 0 }
   0x2   :  { %11 = vsyncpa [#allocation4], 0 }
   0x3   :  { %13 = vsyncpa [#allocation4 + $0x1], 0  ;;  %s946_s12 = smov 0   ;;  %s948_s13 = smov 0  }
   0x4   :  { %s950_s14 = smov 0   ;;  %s952_s15 = smov 0  }
   0x5 LB: > { %s967_s16 = sadd.s32 4294967295, %s915_s15   ;;  %s628_s17 = sadd.s32 4294967294, %s915_s15   ;;  %s915_s15 = sphi %s952_s15, %s1295_s15   ;;  %s911_s14 = sphi %s950_s14, %s1294_s14   ;;  %s907_s13 = sphi %s948_s13, %s1293_s13   ;;  %s903_s12 = sphi %s946_s12, %s1292_s12  }
   0x6   : > { %s971_s18 = sadd.s32 1, %s915_s15   ;;  %s26_s19 = sadd.s32 1, %s911_s14 }
   0x7   : > { %s23_s20 = ssub.s32 %s915_s15, %s971_s18  ;;  %p33_p0 = scmp.ne.s32.totalorder %s911_s14, %s907_s13 }
   0x8   : > { %p24_p1 = scmp.eq.s32.totalorder %s23_s20, 0  ;;  %p34_p2 = scmp.eq.s32.totalorder %s915_s15, 0 }
   0x9   : > { %p39_p3 = scmp.ne.s32.totalorder %s907_s13, %s903_s12  ;;  %p40_p4 = scmp.eq.s32.totalorder %s967_s16, 0 }
   0xa   : > { %s983_s21 = scalar_select %p24_p1, %s911_s14, %s26_s19  }
   0xb   : > { %p985_p5 = por %p34_p2, %p33_p0  ;;  %p989_p6 = por %p40_p4, %p39_p3 }
   0xc   : > { %p105_p7 = scmp.eq.s32.totalorder %s967_s16, 1  ;;  %p111_p8 = scmp.eq.s32.totalorder %s628_s17, 1 }
   0xd   : > { %p774_p10 = scmp.lt.s32.totalorder %s915_s15, 2  ;;  %s137_s26 = sand.u32 1, %s911_s14  }
   0xe   : > { %p996_p11 = por %p105_p7, %p33_p0  ;;  %p1000_p12 = por %p111_p8, %p39_p3 }
   0xf   : > { %s644_s27 = sshll.u32 %s915_s15, 11  ;;  %s631_s28 = sshll.u32 %s137_s26, 7 }
  0x10   : > { %s1286_s24 = scalar_select %p996_p11, 1, 0 }
  0x11   : > { %s1287_s25 = scalar_select %p1000_p12, 1, 0 }
  0x12   : > { %s1009_s4 = scalar_lea.hbm %s1279_s0, %s644_s27  ;;  %s141_s5 = scalar_lea.vmem [#allocation2], %s631_s28 }
  0x13   : > { %s148_s6 = sshll.u32 %s141_s5, 4  ;;  %p1013_p13 = pnand %p774_p10, %p985_p5  ;;  %s1017_s6 = int_to_ptr.vmem [resolvable:$true] %s148_s6 }
  0x14   : > { %s1019_s8 = scalar_lea.sflag [#allocation3], %s137_s26  ;;  %s819_s9 = scalar_lea.hbm %s1009_s4, 2048 }
  0x15   : > { %p820_p0 = scmp.ne.s32.totalorder %s1009_s4, %s819_s9  ;;  %p821_p1 = pneg %p1013_p13 }
  0x16   : > { %s824_s17 = scalar_lea.hbm %s1279_s0, 4096  ;;  %p825_p4 = scmp.lt.u32.totalorder %s1009_s4, %s1279_s0 }
  0x17   : > { %p822_p2 = pnand %p821_p1, %p820_p0  ;;  %p826_p5 = scmp.lt.u32.totalorder %s824_s17, %s819_s9 }
  0x18   : > { %p828_p8 = scmp.lt.u32.totalorder %s819_s9, %s1009_s4 }
  0x19   : > { %p823_p3 = pneg %p822_p2  ;;  %p827_p7 = por %p826_p5, %p825_p4 }
  0x1b   : > { %p829_p10 = por %p828_p8, %p827_p7 }
  0x1d   : > { %p830_p9 = pnand %p829_p10, %p823_p3 }
  0x1f   : > { %833 = shalt.err (!%p830_p9)
}
  0x20   : > { %s834_s22 = scalar_lea.vmem %s1017_s6, 2048  ;;  %s917_s26 = smov [#allocation2]  }
  0x21   : > { %p835_p0 = scmp.ne.s32.totalorder %s1017_s6, %s834_s22  ;;  %s839_s27 = sshll.u32 %s917_s26, 4  ;;  %s840_s27 = int_to_ptr.vmem [resolvable:$false] %s839_s27 }
  0x22   : > { %s841_s28 = scalar_lea.vmem %s840_s27, 4096  ;;  %p842_p11 = scmp.lt.s32.totalorder %s1017_s6, %s840_s27 }
  0x23   : > { %p837_p2 = pnand %p835_p0, %p821_p1  ;;  %p843_p4 = scmp.lt.s32.totalorder %s841_s28, %s834_s22 }
  0x25   : > { %p838_p12 = pneg %p837_p2  ;;  %p844_p5 = por %p843_p4, %p842_p11 }
  0x27   : > { %p845_p7 = pnand %p844_p5, %p838_p12 }
  0x29   : > { %848 = shalt.err (!%p845_p7)
}
  0x2a   : > { %s918_s29 = smov 256   ;;  %s919_s30 = smov 16  }
  0x2b   : > { %769 = dma.hbm_to_vmem [thread:$0]  (!%p1013_p13), %s1009_s4, 2048, %s1017_s6, %s1019_s8, %s918_s29, %s918_s29, %s919_s30  }
  0x2c   : > { %p634_p9 = scmp.ge.s32.totalorder %s915_s15, 1  ;;  %p156_p1 = scmp.lt.s32.totalorder %s915_s15, 3 }
  0x2e   : > { %p157_p3 = pnand %p634_p9, %p156_p1 }
  0x2f   : > { %s1050_s5 = sand.u32 (!%p157_p3), 1, %s907_s13  }
  0x30   : > { %160 = sbr.rel (%p157_p3) target bundleno = 821 (0x335), region = 32  ;;  %s635_s9 = sshll.u32 (!%p157_p3), %s1050_s5, 7 }
  0x31   : > { %s163_s10 = scalar_lea.sflag (!%p157_p3), [#allocation3], %s1050_s5  ;;  %s166_s11 = scalar_lea.vmem (!%p157_p3), [#allocation2], %s635_s9 }
  0x37   : > { %894 = dma.done.wait (%p989_p6), %s163_s10, 2048  }
  0x38   : > { %896 = vsyncadd (%p989_p6), %s163_s10, 4294965248  ;;  %v1060_v0 = vld [vmem:[%s166_s11] sm:$0xff]  ;;  %v1062_v1 = vld [vmem:[%s166_s11 + $0x8] sm:$0xff]  ;;  %v920_v27 = vmov 0.0|0.0   ;;  %vm921_vm0 = vmmov 0   ;;  %v922_v37 = vmov 0.0   ;;  %v253_v59 = vlaneseq }
  0x39   : > { %v1064_v2 = vld [vmem:[%s166_s11 + $0x20] sm:$0xff]  ;;  %v205_v3 = vadd.f32 %v1062_v1, %v1060_v0  ;;  %v1068_v4 = vld [vmem:[%s166_s11 + $0x28] sm:$0xff]  ;;  %v1070_v5 = vld [vmem:[%s166_s11 + $0x10] sm:$0xff]  ;;  %726 = vmatprep.subr.bf16.mxu0 %v920_v27  ;;  %738 = vmatprep.subr.bf16.mxu1 %v920_v27  ;;  %vm264_vm1 = vcmask 130112   ;;  %vm271_vm2 = vcmask 195712   ;;  %vm278_vm3 = vcmask 261312  }
  0x3a   : > { %v1072_v6 = vld [vmem:[%s166_s11 + $0x18] sm:$0xff]  ;;  %v211_v7 = vadd.f32 %v1068_v4, %v1064_v2  ;;  %v1076_v8 = vld [vmem:[%s166_s11 + $0x30] sm:$0xff]  ;;  %v1084_v12 = vld [vmem:[%s166_s11 + $0x40] sm:$0xff]  ;;  %688 = vmatprep.mubr.msk.f32.mxu0 %vm921_vm0, %v922_v37  ;;  %723 = vmatprep.mubr.msk.f32.mxu1 %vm921_vm0, %v922_v37  ;;  %v254_v60 = vand.u32 127, %v253_v59  ;;  %v1174_v61 = vshrl.u32 %v253_v59, 7  ;;  %vm285_vm4 = vcmask 326912  }
  0x3b   : > { %v1078_v9 = vld [vmem:[%s166_s11 + $0x38] sm:$0xff]  ;;  %206 = vadd.xlane.f32.xlu0 %v205_v3  ;;  %v208_v10 = vadd.f32 %v1072_v6, %v1070_v5  ;;  %v1086_v13 = vld [vmem:[%s166_s11 + $0x48] sm:$0xff]  ;;  %v1088_v14 = vld [vmem:[%s166_s11 + $0x50] sm:$0xff]  ;;  %vm292_vm5 = vcmask 392512   ;;  %vm299_vm6 = vcmask 458112   ;;  %vm306_vm7 = vcmask 523712  }
  0x3c   : > { %212 = vadd.xlane.f32.xlu1 %v211_v7  ;;  %v214_v11 = vadd.f32 %v1078_v9, %v1076_v8  ;;  %v1090_v15 = vld [vmem:[%s166_s11 + $0x58] sm:$0xff]  ;;  %v217_v16 = vadd.f32 %v1086_v13, %v1084_v12  ;;  %v1096_v18 = vld [vmem:[%s166_s11 + $0x60] sm:$0xff]  ;;  %v1098_v19 = vld [vmem:[%s166_s11 + $0x68] sm:$0xff]  ;;  %v259_v62 = vadd.s32 4294967288, %v254_v60  ;;  %v266_v3 = vadd.s32 4294967280, %v254_v60  ;;  %s1198_s23 = scalar_lea.vmem [#allocation5], %s635_s9 }
  0x3d   : > { %v220_v17 = vadd.f32 %v1090_v15, %v1088_v14  ;;  %v1100_v20 = vld [vmem:[%s166_s11 + $0x70] sm:$0xff]  ;;  %v1102_v21 = vld [vmem:[%s166_s11 + $0x78] sm:$0xff]  ;;  %v223_v22 = vadd.f32 %v1098_v19, %v1096_v18  ;;  %v237_v24 = vld [vmem:[%s1280_s1] sm:$0xff]  ;;  %v273_v7 = vadd.s32 4294967272, %v254_v60  ;;  %vm308_vm8 = vcmask 523264   ;;  %s645_s9 = sshll.u32 %s967_s16, 11 }
  0x3e   : > { %v226_v23 = vadd.f32 %v1102_v21, %v1100_v20  ;;  %v238_v25 = vld [vmem:[%s1280_s1 + $0x8] sm:$0xff]  ;;  %v239_v28 = vld [vmem:[%s1280_s1 + $0x10] sm:$0xff]  ;;  %v240_v29 = vld [vmem:[%s1280_s1 + $0x18] sm:$0xff]  ;;  %s555_s4 = sshll.u32 %s1198_s23, 4  ;;  %s1229_s8 = scalar_lea.hbm %s1282_s3, %s645_s9  ;;  %s1231_s4 = int_to_ptr.vmem [resolvable:$true] %s555_s4 }
  0x3f   : > { %209 = vadd.xlane.f32.xlu0 %v208_v10  ;;  %v727_v26 = vpack.c.bf16 %v238_v25, %v237_v24  ;;  %v730_v30 = vpack.c.bf16 %v240_v29, %v239_v28  ;;  %v241_v31 = vld [vmem:[%s1280_s1 + $0x20] sm:$0xff]  ;;  %v242_v32 = vld [vmem:[%s1280_s1 + $0x28] sm:$0xff]  ;;  %v243_v34 = vld [vmem:[%s1280_s1 + $0x30] sm:$0xff]  ;;  %s542_s16 = scalar_lea.sflag [#allocation4], %s1050_s5  ;;  %s849_s17 = scalar_lea.vmem %s1231_s4, 2048 }
  0x40   : > { %215 = vadd.xlane.f32.xlu1 %v214_v11  ;;  %v733_v33 = vpack.c.bf16 %v242_v32, %v241_v31  ;;  %v244_v35 = vld [vmem:[%s1280_s1 + $0x38] sm:$0xff]  ;;  %v382_v38 = vld [vmem:[%s1281_s2] sm:$0xff]  ;;  %v383_v39 = vld [vmem:[%s1281_s2 + $0x8] sm:$0xff]  ;;  %v257_v11 = vsub.s32 %v254_v60, %v1174_v61  ;;  %p850_p6 = scmp.ne.s32.totalorder %s1231_s4, %s849_s17  ;;  %p1289_p11 = scmp.ne.s32.totalorder %s1286_s24, 0 }
  0x41   : > { %728 = vmatpush3.bf16.msra.mxu0 %v727_v26  ;;  %v736_v36 = vpack.c.bf16 %v244_v35, %v243_v34  ;;  %v384_v40 = vld [vmem:[%s1281_s2 + $0x10] sm:$0xff]  ;;  %v739_v41 = vpack.c.bf16 %v383_v39, %v382_v38  ;;  %v385_v42 = vld [vmem:[%s1281_s2 + $0x18] sm:$0xff]  ;;  %v386_v44 = vld [vmem:[%s1281_s2 + $0x20] sm:$0xff]  ;;  %v276_v26 = vsub.s32 %v273_v7, %v1174_v61  ;;  %v294_v34 = vadd.s32 4294967248, %v254_v60  ;;  %s923_s19 = smov [#allocation5]  }
  0x42   : > { %729 = vmatprep.subr.bf16.mxu0 %v920_v27  ;;  %v742_v43 = vpack.c.bf16 %v385_v42, %v384_v40  ;;  %v387_v45 = vld [vmem:[%s1281_s2 + $0x28] sm:$0xff]  ;;  %v388_v47 = vld [vmem:[%s1281_s2 + $0x30] sm:$0xff]  ;;  %v389_v48 = vld [vmem:[%s1281_s2 + $0x38] sm:$0xff]  ;;  %v301_v39 = vadd.s32 4294967240, %v254_v60  ;;  %p851_p12 = pnand %p850_p6, %p1289_p11  ;;  %s853_s20 = sshll.u32 %s923_s19, 4  ;;  %s854_s20 = int_to_ptr.vmem [resolvable:$false] %s853_s20 }
  0x43   : > { %218 = vadd.xlane.f32.xlu0 %v217_v16  ;;  %740 = vmatpush3.bf16.msra.mxu1 %v739_v41  ;;  %v745_v46 = vpack.c.bf16 %v387_v45, %v386_v44  ;;  %v748_v49 = vpack.c.bf16 %v389_v48, %v388_v47  ;;  %v390_v50 = vld [vmem:[%s1281_s2 + $0x40] sm:$0xff]  ;;  %v391_v51 = vld [vmem:[%s1281_s2 + $0x48] sm:$0xff]  ;;  %v392_v53 = vld [vmem:[%s1281_s2 + $0x50] sm:$0xff]  ;;  %v297_v47 = vsub.s32 %v294_v34, %v1174_v61  ;;  %s855_s22 = scalar_lea.vmem %s854_s20, 4096  ;;  %p856_p8 = scmp.lt.s32.totalorder %s1231_s4, %s854_s20 }
  0x44   : > { %221 = vadd.xlane.f32.xlu1 %v220_v17  ;;  %741 = vmatprep.subr.bf16.mxu1 %v920_v27  ;;  %v751_v52 = vpack.c.bf16 %v391_v51, %v390_v50  ;;  %v393_v54 = vld [vmem:[%s1281_s2 + $0x58] sm:$0xff]  ;;  %v394_v56 = vld [vmem:[%s1281_s2 + $0x60] sm:$0xff]  ;;  %v395_v57 = vld [vmem:[%s1281_s2 + $0x68] sm:$0xff]  ;;  %v262_v17 = vsub.s32 %v259_v62, %v1174_v61  ;;  %v304_v50 = vsub.s32 %v301_v39, %v1174_v61  ;;  %p852_p13 = pneg %p851_p12  ;;  %p857_p10 = scmp.lt.s32.totalorder %s855_s22, %s849_s17 }
  0x45   : > { %731 = vmatpush3.bf16.msra.mxu0 %v730_v30  ;;  %v754_v55 = vpack.c.bf16 %v393_v54, %v392_v53  ;;  %v757_v58 = vpack.c.bf16 %v395_v57, %v394_v56  ;;  %v397_v62 = vld [vmem:[%s1281_s2 + $0x78] sm:$0xff] }
  0x46   : > { %732 = vmatprep.subr.bf16.mxu0 %v920_v27  ;;  %p858_p0 = por %p857_p10, %p856_p8 }
  0x47   : > { %224 = vadd.xlane.f32.xlu0 %v223_v22  ;;  %743 = vmatpush3.bf16.msra.mxu1 %v742_v43  ;;  %v280_v22 = vadd.s32 4294967264, %v254_v60 }
  0x48   : > { %227 = vadd.xlane.f32.xlu1 %v226_v23  ;;  %744 = vmatprep.subr.bf16.mxu1 %v920_v27  ;;  %v269_v23 = vsub.s32 %v266_v3, %v1174_v61  ;;  %p859_p2 = pnand %p858_p0, %p852_p13 }
  0x49   : > { %734 = vmatpush3.bf16.msra.mxu0 %v733_v33  ;;  %v283_v33 = vsub.s32 %v280_v22, %v1174_v61 }
  0x4a   : > { %735 = vmatprep.subr.bf16.mxu0 %v920_v27 }
  0x4b   : > { %746 = vmatpush3.bf16.msra.mxu1 %v745_v46 }
  0x4c   : > { %747 = vmatprep.subr.bf16.mxu1 %v920_v27 }
  0x4d   : > { %737 = vmatpush3.bf16.msra.mxu0 %v736_v36 }
  0x4f   : > { %749 = vmatpush3.bf16.msra.mxu1 %v748_v49 }
  0x50   : > { %750 = vmatprep.subr.bf16.mxu1 %v920_v27 }
  0x53   : > { %752 = vmatpush3.bf16.msra.mxu1 %v751_v52 }
  0x54   : > { %753 = vmatprep.subr.bf16.mxu1 %v920_v27 }
  0x57   : > { %755 = vmatpush3.bf16.msra.mxu1 %v754_v55 }
  0x58   : > { %756 = vmatprep.subr.bf16.mxu1 %v920_v27 }
  0x5b   : > { %758 = vmatpush3.bf16.msra.mxu1 %v757_v58 }
  0x5c   : > { %759 = vmatprep.subr.bf16.mxu1 %v920_v27  ;;  %v287_v27 = vadd.s32 4294967256, %v254_v60  ;;  %v396_v60 = vld [vmem:[%s1281_s2 + $0x70] sm:$0xff] }
  0x5e   : > { %v290_v38 = vsub.s32 %v287_v27, %v1174_v61 }
  0xc8   : > { %v207_v63 = vpop.xlane.xlu0 %206 }
  0xc9   : > { %v213_v10 = vpop.xlane.xlu1 %212  ;;  %v229_v16 = vmul.f32 0.00390625, %v207_v63  ;;  %v760_v63 = vpack.c.bf16 %v397_v62, %v396_v60 }
  0xca   : > { %v231_v24 = vmul.f32 0.00390625, %v213_v10 }
  0xcb   : > { %v258_v31 = vrot.slane %v229_v16, %v257_v11  ;;  %761 = vmatpush3.bf16.msra.mxu1 %v760_v63 }
  0xcc   : > { %v210_v25 = vpop.xlane.xlu0 %209  ;;  %v270_v35 = vrot.slane %v231_v24, %v269_v23  ;;  %v476_v24 = vsub.s32 0, %v1174_v61 }
  0xcd   : > { %v230_v28 = vmul.f32 0.00390625, %v210_v25  ;;  %v216_v29 = vpop.xlane.xlu1 %215 }
  0xce   : > { %v232_v30 = vmul.f32 0.00390625, %v216_v29 }
  0xcf   : > { %v263_v32 = vrot.slane %v230_v28, %v262_v17 }
  0xd0   : > { %v277_v36 = vrot.slane %v232_v30, %v276_v26  ;;  %v219_v37 = vpop.xlane.xlu0 %218 }
  0xd1   : > { %v265_v40 = vsel %vm264_vm1, %v263_v32, %v258_v31  ;;  %v233_v41 = vmul.f32 0.00390625, %v219_v37  ;;  %v222_v42 = vpop.xlane.xlu1 %221 }
  0xd2   : > { %v272_v43 = vsel %vm271_vm2, %v270_v35, %v265_v40  ;;  %v234_v44 = vmul.f32 0.00390625, %v222_v42 }
  0xd3   : > { %v279_v45 = vsel %vm278_vm3, %v277_v36, %v272_v43  ;;  %v284_v46 = vrot.slane %v233_v41, %v283_v33 }
  0xd4   : > { %v291_v48 = vrot.slane %v234_v44, %v290_v38  ;;  %v225_v49 = vpop.xlane.xlu0 %224 }
  0xd5   : > { %v286_v51 = vsel %vm285_vm4, %v284_v46, %v279_v45  ;;  %v235_v52 = vmul.f32 0.00390625, %v225_v49  ;;  %v228_v53 = vpop.xlane.xlu1 %227 }
  0xd6   : > { %v236_v54 = vmul.f32 0.00390625, %v228_v53  ;;  %v293_v56 = vsel %vm292_vm5, %v291_v48, %v286_v51 }
  0xd7   : > { %v298_v55 = vrot.slane %v235_v52, %v297_v47 }
  0xd8   : > { %v305_v57 = vrot.slane %v236_v54, %v304_v50 }
  0xd9   : > { %v300_v58 = vsel %vm299_vm6, %v298_v55, %v293_v56 }
  0xda   : > { %v307_v59 = vsel %vm306_vm7, %v305_v57, %v300_v58 }
  0xdb   : > { %689 = vmatmul.mubr.msk.f32.vlgmr.msra.gmra.mrb[0].mxu0 %vm308_vm8, %v307_v59 }
 0x1ae   : > { %v377_v3 = vpop.f32.mrb[0].mxu0 }
 0x1af   : > { %v381_v7 = vmax.f32 %v377_v3, 0.0  ;;  %v690_v10 = vpop.f32.mrb[1].mxu0 }
 0x1b1   : > { %724 = vmatmul.mubr.f32.vlgmr.msra.gmra.mrb[0].mxu1 %v381_v7 }
 0x284   : > { %v464_v11 = vpop.f32.mrb[0].mxu1 }
 0x285   : > { %v638_v16 = vmul.f32 -1.442695, %v464_v11  ;;  %v725_v17 = vpop.f32.mrb[1].mxu1 }
 0x287   : > { %815 = vpow2.f32 %v638_v16 }
 0x291   : > { %v816_v22 = vpop.eup %815 }
 0x292   : > { %v471_v23 = vadd.f32 1.0, %v816_v22 }
 0x294   : > { %817 = vrcp.f32 %v471_v23 }
 0x29e   : > { %v818_v25 = vpop.eup %817 }
 0x29f   : > { %v477_v26 = vrot.slane %v818_v25, %v476_v24 }
 0x2a1   : > { %483 = vbcast.lane.b32.xlu1 %v477_v26, 264  ;;  %479 = vbcast.lane.b32.xlu0 %v477_v26, 256 }
 0x2a5   : > { %487 = vbcast.lane.b32.xlu1 %v477_v26, 272  ;;  %495 = vbcast.lane.b32.xlu0 %v477_v26, 288 }
 0x2a9   : > { %491 = vbcast.lane.b32.xlu1 %v477_v26, 280  ;;  %503 = vbcast.lane.b32.xlu0 %v477_v26, 304 }
 0x2ad   : > { %499 = vbcast.lane.b32.xlu1 %v477_v26, 296 }
 0x2b1   : > { %507 = vbcast.lane.b32.xlu1 %v477_v26, 312 }
 0x313   : > { %v484_v27 = vpop.permute.xlu1 %483  ;;  %v480_v28 = vpop.permute.xlu0 %479 }
 0x314   : > { %v511_v29 = vmul.f32 %v484_v27, %v1070_v5  ;;  %v512_v30 = vmul.f32 %v484_v27, %v1072_v6  ;;  %v509_v31 = vmul.f32 %v480_v28, %v1060_v0  ;;  %v510_v61 = vmul.f32 %v480_v28, %v1062_v1 }
 0x316   : > { %527 = vst [vmem:[%s1198_s23 + $0x10] sm:$0xff] %v511_v29  ;;  %528 = vst [vmem:[%s1198_s23 + $0x18] sm:$0xff] %v512_v30 }
 0x317   : > { %525 = vst [vmem:[%s1198_s23] sm:$0xff] %v509_v31  ;;  %526 = vst [vmem:[%s1198_s23 + $0x8] sm:$0xff] %v510_v61  ;;  %v488_v5 = vpop.permute.xlu1 %487  ;;  %v496_v0 = vpop.permute.xlu0 %495 }
 0x318   : > { %v513_v1 = vmul.f32 %v488_v5, %v1064_v2  ;;  %v514_v6 = vmul.f32 %v488_v5, %v1068_v4  ;;  %v517_v32 = vmul.f32 %v496_v0, %v1084_v12  ;;  %v518_v33 = vmul.f32 %v496_v0, %v1086_v13 }
 0x31a   : > { %529 = vst [vmem:[%s1198_s23 + $0x20] sm:$0xff] %v513_v1  ;;  %530 = vst [vmem:[%s1198_s23 + $0x28] sm:$0xff] %v514_v6 }
 0x31b   : > { %533 = vst [vmem:[%s1198_s23 + $0x40] sm:$0xff] %v517_v32  ;;  %534 = vst [vmem:[%s1198_s23 + $0x48] sm:$0xff] %v518_v33  ;;  %v492_v34 = vpop.permute.xlu1 %491  ;;  %v504_v35 = vpop.permute.xlu0 %503 }
 0x31c   : > { %v515_v2 = vmul.f32 %v492_v34, %v1076_v8  ;;  %v516_v36 = vmul.f32 %v492_v34, %v1078_v9  ;;  %v521_v4 = vmul.f32 %v504_v35, %v1096_v18  ;;  %v522_v12 = vmul.f32 %v504_v35, %v1098_v19 }
 0x31e   : > { %531 = vst [vmem:[%s1198_s23 + $0x30] sm:$0xff] %v515_v2  ;;  %532 = vst [vmem:[%s1198_s23 + $0x38] sm:$0xff] %v516_v36 }
 0x31f   : > { %537 = vst [vmem:[%s1198_s23 + $0x60] sm:$0xff] %v521_v4  ;;  %538 = vst [vmem:[%s1198_s23 + $0x68] sm:$0xff] %v522_v12  ;;  %v500_v13 = vpop.permute.xlu1 %499 }
 0x320   : > { %v519_v37 = vmul.f32 %v500_v13, %v1088_v14  ;;  %v520_v38 = vmul.f32 %v500_v13, %v1090_v15 }
 0x322   : > { %535 = vst [vmem:[%s1198_s23 + $0x50] sm:$0xff] %v519_v37  ;;  %536 = vst [vmem:[%s1198_s23 + $0x58] sm:$0xff] %v520_v38 }
 0x323   : > { %v508_v8 = vpop.permute.xlu1 %507 }
 0x324   : > { %v523_v9 = vmul.f32 %v508_v8, %v1100_v20  ;;  %v524_v14 = vmul.f32 %v508_v8, %v1102_v21 }
 0x326   : > { %539 = vst [vmem:[%s1198_s23 + $0x70] sm:$0xff] %v523_v9  ;;  %540 = vst [vmem:[%s1198_s23 + $0x78] sm:$0xff] %v524_v14 }
 0x327   : > { %862 = shalt.err (!%p859_p2)
}
 0x328   : > { %s863_s26 = scalar_lea.hbm %s1229_s8, 2048  ;;  %s867_s29 = scalar_lea.hbm %s1282_s3, 4096 }
 0x329   : > { %p864_p4 = scmp.ne.s32.totalorder %s1229_s8, %s863_s26  ;;  %p868_p9 = scmp.lt.u32.totalorder %s1229_s8, %s1282_s3 }
 0x32a   : > { %p869_p1 = scmp.lt.u32.totalorder %s867_s29, %s863_s26  ;;  %p871_p6 = scmp.lt.u32.totalorder %s863_s26, %s1229_s8 }
 0x32b   : > { %p865_p5 = pnand %p864_p4, %p1289_p11 }
 0x32c   : > { %p870_p3 = por %p869_p1, %p868_p9 }
 0x32d   : > { %p866_p7 = pneg %p865_p5 }
 0x32e   : > { %p872_p12 = por %p871_p6, %p870_p3 }
 0x330   : > { %p873_p13 = pnand %p872_p12, %p866_p7 }
 0x332   : > { %876 = shalt.err (!%p873_p13)
}
 0x333   : > { %s924_s11 = smov 256   ;;  %s925_s23 = smov 16  }
 0x334   : > { %764 = dma.vmem_to_hbm [thread:$0]  (%p1289_p11), %s1231_s4, 2048, %s1229_s8, %s542_s16, %s924_s11, %s924_s11, %s925_s23  }
 0x335 PF: > { %s570_s9 = sand.u32 1, %s903_s12   ;;  %p1290_p8 = scmp.ne.s32.totalorder %s1287_s25, 0 }
 0x336   : > { %p1291_p10 = scmp.ge.s32.totalorder %s915_s15, 2  ;;  %s571_s6 = scalar_lea.sflag [#allocation4], %s570_s9 }
 0x338   : > { %p771_p0 = pnand %p1291_p10, %p1290_p8 }
 0x33a   : > { %898 = dma.done.wait (!%p771_p0), %s571_s6, 2048  }
 0x33b   : > { %900 = vsyncadd (!%p771_p0), %s571_s6, 4294965248  ;;  %p16_p2 = scmp.ge.s32.totalorder %s971_s18, 4   ;;  %s1292_s12 = smov %s907_s13 }
 0x33c   : > { %s1293_s13 = smov %s911_s14  ;;  %s1294_s14 = smov %s983_s21 }
 0x33d   : > { %s1295_s15 = smov %s971_s18  ;;  %18 = sbr.rel (!%p16_p2) target bundleno = 5 (0x5), region = 77 }
 0x344   :  { %576 = vsyncpa [#allocation3], 1 }
 0x345   :  { %578 = vsyncpa [#allocation3 + $0x1], 1 }
 0x346   :  { %579 = vsyncpa [#allocation4], 1 }
 0x347   :  { %581 = vsyncpa [#allocation4 + $0x1], 1 }

</bundles_post_ra>
